<compile_context>
chip_gen: v5e
topology: v5e:2x2
jax: 0.10.0
libtpu: 0.0.40
codegen_flags: <defaults>
</compile_context>

<pallas_src>
import math

import jax
import jax.numpy as jnp
from jax import lax
from jax.experimental import pallas as pl
from jax.experimental.pallas import tpu as pltpu


def _make_kernel(H, W, Cin, Cout, batch_tile, use_im2col):
    """Builds the kernel body for given static shapes / codepath."""
    HW = H * W

    def kernel(x_ref, w1_ref, b1_ref, w2_ref, b2_ref, o_ref, patch_ref=None):
        # x_ref  : (bt, Cin, H*W)  f32   input block (also the identity residual)
        # w*_ref : (Cout, 9*Cin)   bf16  im2col weights with BN scale folded in
        # b*_ref : (Cout, 1)       f32   folded BN bias
        # o_ref  : (bt, Cout, H*W) f32   output block
        # patch_ref: (9*Cin, H*W)  bf16  im2col staging scratch (small-C path only)

        # ---- W-border masks for the dx = 0 / 2 taps.  Hoisted: computed once and
        # reused by both convs and all images in the batch tile.  The dy (H)
        # border needs no mask: out-of-image rows fall off the end of the fused
        # H*W lane axis and are zero-filled by the shift itself.
        p = lax.broadcasted_iota(jnp.int32, (1, HW), 1)
        if W & (W - 1) == 0:
            w_of_p = jnp.bitwise_and(p, W - 1)      # p % W for power-of-two W
        else:
            w_of_p = p % W
        not_left = jnp.broadcast_to(w_of_p != 0, (Cin, HW))         # for dx == 0 taps
        not_right = jnp.broadcast_to(w_of_p != (W - 1), (Cin, HW))  # for dx == 2 taps

        def shifted_tap(xb, dy, dx):
            """tap[c, h*W + w] = xb[c, (h+dy-1)*W + (w+dx-1)], zero outside the image.

            Implemented as a lane-domain shift with zero fill (no padded buffer,
            no sublane-offset accesses) + a W-border column mask.
            """
            off = (dy - 1) * W + (dx - 1)
            if off == 0:
                v = xb
            elif off > 0:
                v = jnp.concatenate(
                    [xb[:, off:], jnp.zeros((xb.shape[0], off), xb.dtype)], axis=1)
            else:
                v = jnp.concatenate(
                    [jnp.zeros((xb.shape[0], -off), xb.dtype), xb[:, :off]], axis=1)
            if dx == 0:
                v = jnp.where(not_left, v, jnp.zeros_like(v))
            elif dx == 2:
                v = jnp.where(not_right, v, jnp.zeros_like(v))
            return v

        def conv_bn(xb, w_ref, b_ref):
            """3x3 conv (stride 1, pad 1) + folded BN.  xb: (C, H*W) bf16 -> (Cout, H*W) f32."""
            if use_im2col:
                # Small C: stage the im2col patch matrix in bf16 VMEM and do a
                # single MXU matmul (Cout, 9C) x (9C, H*W).
                for tap in range(9):
                    dy, dx = divmod(tap, 3)
                    patch_ref[tap * Cin:(tap + 1) * Cin, :] = shifted_tap(xb, dy, dx)
                acc = jnp.dot(w_ref[...], patch_ref[...],
                              preferred_element_type=jnp.float32)
            else:
                # Large C: drop im2col staging entirely -- accumulate 9 K=C matmuls.
                acc = jnp.zeros((Cout, HW), jnp.float32)
                for tap in range(9):
                    dy, dx = divmod(tap, 3)
                    acc = acc + jnp.dot(w_ref[:, tap * Cin:(tap + 1) * Cin],
                                        shifted_tap(xb, dy, dx),
                                        preferred_element_type=jnp.float32)
            return acc + b_ref[...]  # folded BN bias, f32

        for b in range(batch_tile):
            x_f32 = x_ref[b]                                  # (Cin, H*W) f32 (residual)
            xb = x_f32.astype(jnp.bfloat16)
            y1 = jnp.maximum(conv_bn(xb, w1_ref, b1_ref), 0.0)            # conv1+bn1+relu1
            y2 = conv_bn(y1.astype(jnp.bfloat16), w2_ref, b2_ref)         # conv2+bn2
            o_ref[b] = jnp.maximum(y2 + x_f32, 0.0)                       # +identity, relu2

    return kernel


def fold_bn(gamma, beta, mean, var, eps=1e-5):
    scale = gamma.astype(jnp.float32) / jnp.sqrt(var.astype(jnp.float32) + eps)
    bias = beta.astype(jnp.float32) - mean.astype(jnp.float32) * scale
    return scale, bias


def basic_block_pallas(x_nchw, params, stride=1, batch_tile=1, use_im2col=None):
    # TODO(synk): stride>1 / downsample / PReLU paths not implemented (module defaults).
    assert stride == 1, "downsample=None => stride must be 1"
    N, Cin, H, W = x_nchw.shape
    Cout = params["w1"].shape[-1]
    assert Cin == Cout, "identity residual requires inplanes == planes"
    assert N % batch_tile == 0
    HW = H * W
    if use_im2col is None:
        use_im2col = Cin < 128  # per-tap K=C matmuls are MXU-efficient once C >= 128

    # NCHW -> (N, C, H*W): a free reshape -- no HBM round-trip transpose.
    x = x_nchw.reshape(N, Cin, HW).astype(jnp.float32)

    # Fold BN scale into the conv weights in f32 (before the bf16 cast).
    s1, b1 = fold_bn(params["g1"], params["b1"], params["m1"], params["v1"])
    s2, b2 = fold_bn(params["g2"], params["b2"], params["m2"], params["v2"])
    # HWIO (3,3,Cin,Cout) -> (9*Cin, Cout) -> (Cout, 9*Cin), row-scaled by the BN scale.
    w1m = (params["w1"].astype(jnp.float32).reshape(9 * Cin, Cout).T
           * s1[:, None]).astype(jnp.bfloat16)
    w2m = (params["w2"].astype(jnp.float32).reshape(9 * Cout, Cout).T
           * s2[:, None]).astype(jnp.bfloat16)
    b1m = b1.reshape(Cout, 1)
    b2m = b2.reshape(Cout, 1)

    kernel = _make_kernel(H, W, Cin, Cout, batch_tile, use_im2col)
    scratch_shapes = ([pltpu.VMEM((9 * Cin, HW), jnp.bfloat16)] if use_im2col else [])

    out = pl.pallas_call(
        kernel,
        out_shape=jax.ShapeDtypeStruct((N, Cout, HW), jnp.float32),
        grid_spec=pltpu.PrefetchScalarGridSpec(
            num_scalar_prefetch=0,
            grid=(N // batch_tile,),
            in_specs=[
                pl.BlockSpec((batch_tile, Cin, HW), lambda n: (n, 0, 0)),   # x
                pl.BlockSpec((Cout, 9 * Cin), lambda n: (0, 0)),            # w1 (bf16, scale-folded)
                pl.BlockSpec((Cout, 1), lambda n: (0, 0)),                  # bias1
                pl.BlockSpec((Cout, 9 * Cout), lambda n: (0, 0)),           # w2 (bf16, scale-folded)
                pl.BlockSpec((Cout, 1), lambda n: (0, 0)),                  # bias2
            ],
            out_specs=pl.BlockSpec((batch_tile, Cout, HW), lambda n: (n, 0, 0)),
            scratch_shapes=scratch_shapes,
        ),
        compiler_params=pltpu.CompilerParams(
            dimension_semantics=("parallel",),              # shard batch across TCs (v7x)
            vmem_limit_bytes=64 * 1024 * 1024,               # raise v5e/v6e/v7x scoped default
        ),
    )(x, w1m, b1m, w2m, b2m)

    return out.reshape(N, Cout, H, W)


def basic_block_ref(x_nchw, params, eps=1e-5):
    """Pure-JAX f32 reference (inference-mode BN)."""
    x = jnp.transpose(x_nchw, (0, 2, 3, 1)).astype(jnp.float32)

    def conv(v, w):
        return lax.conv_general_dilated(
            v, w, (1, 1), ((1, 1), (1, 1)),
            dimension_numbers=("NHWC", "HWIO", "NHWC"))

    def bn(v, g, b, m, s):
        return (v - m) / jnp.sqrt(s + eps) * g + b

    out = conv(x, params["w1"])
    out = bn(out, params["g1"], params["b1"], params["m1"], params["v1"])
    out = jax.nn.relu(out)
    out = conv(out, params["w2"])
    out = bn(out, params["g2"], params["b2"], params["m2"], params["v2"])
    out = jax.nn.relu(out + x)
    return jnp.transpose(out, (0, 3, 1, 2))


if __name__ == "__main__":
    # Small shapes consistent with BasicBlock(inplanes=4, planes=4, stride=1).
    N, C, H, W = 2, 4, 16, 16
    key = jax.random.PRNGKey(0)
    ks = jax.random.split(key, 12)

    fan_in = 9 * C
    params = {
        "w1": jax.random.normal(ks[0], (3, 3, C, C), jnp.float32) / math.sqrt(fan_in),
        "w2": jax.random.normal(ks[1], (3, 3, C, C), jnp.float32) / math.sqrt(fan_in),
        "g1": 1.0 + 0.1 * jax.random.normal(ks[2], (C,), jnp.float32),
        "b1": 0.1 * jax.random.normal(ks[3], (C,), jnp.float32),
        "m1": 0.1 * jax.random.normal(ks[4], (C,), jnp.float32),
        "v1": 0.5 + jnp.abs(jax.random.normal(ks[5], (C,), jnp.float32)),
        "g2": 1.0 + 0.1 * jax.random.normal(ks[6], (C,), jnp.float32),
        "b2": 0.1 * jax.random.normal(ks[7], (C,), jnp.float32),
        "m2": 0.1 * jax.random.normal(ks[8], (C,), jnp.float32),
        "v2": 0.5 + jnp.abs(jax.random.normal(ks[9], (C,), jnp.float32)),
    }

    x = jax.random.normal(ks[10], (N, C, H, W), jnp.float32)  # PyTorch-style NCHW input

    ref = jax.block_until_ready(basic_block_ref(x, params))

    # Default path: single bf16 im2col matmul per conv (small-C regime), batch_tile=1.
    out1 = jax.block_until_ready(basic_block_pallas(x, params))
    assert out1.shape == (N, C, H, W)
    err1 = jnp.max(jnp.abs(out1 - ref))
    assert jnp.allclose(out1, ref, atol=5e-2, rtol=5e-2), f"max abs err = {err1}"

    # Per-tap accumulation path (large-C codepath) + 2 images per grid step.
    out2 = jax.block_until_ready(
        basic_block_pallas(x, params, batch_tile=2, use_im2col=False))
    err2 = jnp.max(jnp.abs(out2 - ref))
    assert jnp.allclose(out2, ref, atol=5e-2, rtol=5e-2), f"max abs err = {err2}"

    print("KERNEL_OK")
</pallas_src>

<mosaic_0001>
module attributes {stable_mosaic.version = 11 : i64} {
  func.func @kernel(%arg0: i32, %arg1: memref<1x4x256xf32, #tpu.memory_space<vmem>>, %arg2: memref<4x36xbf16, #tpu.memory_space<vmem>>, %arg3: memref<4x1xf32, #tpu.memory_space<vmem>>, %arg4: memref<4x36xbf16, #tpu.memory_space<vmem>>, %arg5: memref<4x1xf32, #tpu.memory_space<vmem>>, %arg6: memref<1x4x256xf32, #tpu.memory_space<vmem>>, %arg7: memref<36x256xbf16, #tpu.memory_space<vmem>>) attributes {dimension_semantics = [#tpu.dimension_semantics<parallel>], iteration_bounds = array<i64: 2>, scalar_prefetch = 0 : i64, scratch_operands = 1 : i64, tpu.core_type = #tpu.core_type<tc>, window_params = [{transform_indices = @transform_0, window_bounds = array<i64: 1, 4, 256>}, {pipeline_mode = #tpu.pipeline_mode<synchronous>, transform_indices = @transform_1, window_bounds = array<i64: 4, 36>}, {pipeline_mode = #tpu.pipeline_mode<synchronous>, transform_indices = @transform_2, window_bounds = array<i64: 4, 1>}, {pipeline_mode = #tpu.pipeline_mode<synchronous>, transform_indices = @transform_3, window_bounds = array<i64: 4, 36>}, {pipeline_mode = #tpu.pipeline_mode<synchronous>, transform_indices = @transform_4, window_bounds = array<i64: 4, 1>}, {transform_indices = @transform_5, window_bounds = array<i64: 1, 4, 256>}]} {
    %0 = tpu.iota {dimensions = array<i32: 1>} : vector<1x256xi32>
    %c15_i32 = arith.constant 15 : i32
    %1 = vector.broadcast %c15_i32 : i32 to vector<1x256xi32>
    %2 = arith.andi %0, %1 : vector<1x256xi32>
    %c0_i32 = arith.constant 0 : i32
    %3 = vector.broadcast %c0_i32 : i32 to vector<1x256xi32>
    %4 = arith.cmpi ne, %2, %3 : vector<1x256xi32>
    %5 = vector.shape_cast %4 : vector<1x256xi1> to vector<1x256xi1>
    %6 = vector.broadcast %5 : vector<1x256xi1> to vector<4x256xi1>
    %c15_i32_0 = arith.constant 15 : i32
    %7 = vector.broadcast %c15_i32_0 : i32 to vector<1x256xi32>
    %8 = arith.cmpi ne, %2, %7 : vector<1x256xi32>
    %9 = vector.shape_cast %8 : vector<1x256xi1> to vector<1x256xi1>
    %10 = vector.broadcast %9 : vector<1x256xi1> to vector<4x256xi1>
    %c0 = arith.constant 0 : index
    %c0_1 = arith.constant 0 : index
    %c0_2 = arith.constant 0 : index
    %11 = vector.load %arg1[%c0, %c0_1, %c0_2] : memref<1x4x256xf32, #tpu.memory_space<vmem>>, vector<1x4x256xf32>
    %12 = vector.shape_cast %11 : vector<1x4x256xf32> to vector<4x256xf32>
    %13 = arith.truncf %12 : vector<4x256xf32> to vector<4x256xbf16>
    %cst = arith.constant 0.000000e+00 : bf16
    %14 = vector.broadcast %cst : bf16 to vector<4x17xbf16>
    %15 = vector.extract_strided_slice %13 {offsets = [0, 0], sizes = [4, 239], strides = [1, 1]} : vector<4x256xbf16> to vector<4x239xbf16>
    %16 = tpu.concatenate %14, %15 in 1 : vector<4x17xbf16>, vector<4x239xbf16> -> vector<4x256xbf16>
    %cst_3 = arith.constant 0.000000e+00 : bf16
    %17 = vector.broadcast %cst_3 : bf16 to vector<4x256xbf16>
    %18 = arith.select %6, %16, %17 : vector<4x256xi1>, vector<4x256xbf16>
    %c0_4 = arith.constant 0 : index
    %c0_5 = arith.constant 0 : index
    %19 = vector.load %arg7[%c0_4, %c0_5] : memref<36x256xbf16, #tpu.memory_space<vmem>>, vector<4x256xbf16>
    tpu.vector_store %arg7[%c0_4, %c0_5], %18 {strides = array<i32>} : memref<36x256xbf16, #tpu.memory_space<vmem>>, vector<4x256xbf16>,
    %cst_6 = arith.constant 0.000000e+00 : bf16
    %20 = vector.broadcast %cst_6 : bf16 to vector<4x16xbf16>
    %21 = vector.extract_strided_slice %13 {offsets = [0, 0], sizes = [4, 240], strides = [1, 1]} : vector<4x256xbf16> to vector<4x240xbf16>
    %22 = tpu.concatenate %20, %21 in 1 : vector<4x16xbf16>, vector<4x240xbf16> -> vector<4x256xbf16>
    %c4 = arith.constant 4 : index
    %c0_7 = arith.constant 0 : index
    %23 = vector.load %arg7[%c4, %c0_7] : memref<36x256xbf16, #tpu.memory_space<vmem>>, vector<4x256xbf16>
    tpu.vector_store %arg7[%c4, %c0_7], %22 {strides = array<i32>} : memref<36x256xbf16, #tpu.memory_space<vmem>>, vector<4x256xbf16>,
    %cst_8 = arith.constant 0.000000e+00 : bf16
    %24 = vector.broadcast %cst_8 : bf16 to vector<4x15xbf16>
    %25 = vector.extract_strided_slice %13 {offsets = [0, 0], sizes = [4, 241], strides = [1, 1]} : vector<4x256xbf16> to vector<4x241xbf16>
    %26 = tpu.concatenate %24, %25 in 1 : vector<4x15xbf16>, vector<4x241xbf16> -> vector<4x256xbf16>
    %cst_9 = arith.constant 0.000000e+00 : bf16
    %27 = vector.broadcast %cst_9 : bf16 to vector<4x256xbf16>
    %28 = arith.select %10, %26, %27 : vector<4x256xi1>, vector<4x256xbf16>
    %c8 = arith.constant 8 : index
    %c0_10 = arith.constant 0 : index
    %29 = vector.load %arg7[%c8, %c0_10] : memref<36x256xbf16, #tpu.memory_space<vmem>>, vector<4x256xbf16>
    tpu.vector_store %arg7[%c8, %c0_10], %28 {strides = array<i32>} : memref<36x256xbf16, #tpu.memory_space<vmem>>, vector<4x256xbf16>,
    %cst_11 = arith.constant 0.000000e+00 : bf16
    %30 = vector.broadcast %cst_11 : bf16 to vector<4x1xbf16>
    %31 = vector.extract_strided_slice %13 {offsets = [0, 0], sizes = [4, 255], strides = [1, 1]} : vector<4x256xbf16> to vector<4x255xbf16>
    %32 = tpu.concatenate %30, %31 in 1 : vector<4x1xbf16>, vector<4x255xbf16> -> vector<4x256xbf16>
    %cst_12 = arith.constant 0.000000e+00 : bf16
    %33 = vector.broadcast %cst_12 : bf16 to vector<4x256xbf16>
    %34 = arith.select %6, %32, %33 : vector<4x256xi1>, vector<4x256xbf16>
    %c12 = arith.constant 12 : index
    %c0_13 = arith.constant 0 : index
    %35 = vector.load %arg7[%c12, %c0_13] : memref<36x256xbf16, #tpu.memory_space<vmem>>, vector<4x256xbf16>
    tpu.vector_store %arg7[%c12, %c0_13], %34 {strides = array<i32>} : memref<36x256xbf16, #tpu.memory_space<vmem>>, vector<4x256xbf16>,
    %c16 = arith.constant 16 : index
    %c0_14 = arith.constant 0 : index
    %36 = vector.load %arg7[%c16, %c0_14] : memref<36x256xbf16, #tpu.memory_space<vmem>>, vector<4x256xbf16>
    tpu.vector_store %arg7[%c16, %c0_14], %13 {strides = array<i32>} : memref<36x256xbf16, #tpu.memory_space<vmem>>, vector<4x256xbf16>,
    %37 = vector.extract_strided_slice %13 {offsets = [0, 1], sizes = [4, 255], strides = [1, 1]} : vector<4x256xbf16> to vector<4x255xbf16>
    %cst_15 = arith.constant 0.000000e+00 : bf16
    %38 = vector.broadcast %cst_15 : bf16 to vector<4x1xbf16>
    %39 = tpu.concatenate %37, %38 in 1 : vector<4x255xbf16>, vector<4x1xbf16> -> vector<4x256xbf16>
    %cst_16 = arith.constant 0.000000e+00 : bf16
    %40 = vector.broadcast %cst_16 : bf16 to vector<4x256xbf16>
    %41 = arith.select %10, %39, %40 : vector<4x256xi1>, vector<4x256xbf16>
    %c20 = arith.constant 20 : index
    %c0_17 = arith.constant 0 : index
    %42 = vector.load %arg7[%c20, %c0_17] : memref<36x256xbf16, #tpu.memory_space<vmem>>, vector<4x256xbf16>
    tpu.vector_store %arg7[%c20, %c0_17], %41 {strides = array<i32>} : memref<36x256xbf16, #tpu.memory_space<vmem>>, vector<4x256xbf16>,
    %43 = vector.extract_strided_slice %13 {offsets = [0, 15], sizes = [4, 241], strides = [1, 1]} : vector<4x256xbf16> to vector<4x241xbf16>
    %cst_18 = arith.constant 0.000000e+00 : bf16
    %44 = vector.broadcast %cst_18 : bf16 to vector<4x15xbf16>
    %45 = tpu.concatenate %43, %44 in 1 : vector<4x241xbf16>, vector<4x15xbf16> -> vector<4x256xbf16>
    %cst_19 = arith.constant 0.000000e+00 : bf16
    %46 = vector.broadcast %cst_19 : bf16 to vector<4x256xbf16>
    %47 = arith.select %6, %45, %46 : vector<4x256xi1>, vector<4x256xbf16>
    %c24 = arith.constant 24 : index
    %c0_20 = arith.constant 0 : index
    %48 = vector.load %arg7[%c24, %c0_20] : memref<36x256xbf16, #tpu.memory_space<vmem>>, vector<4x256xbf16>
    tpu.vector_store %arg7[%c24, %c0_20], %47 {strides = array<i32>} : memref<36x256xbf16, #tpu.memory_space<vmem>>, vector<4x256xbf16>,
    %49 = vector.extract_strided_slice %13 {offsets = [0, 16], sizes = [4, 240], strides = [1, 1]} : vector<4x256xbf16> to vector<4x240xbf16>
    %cst_21 = arith.constant 0.000000e+00 : bf16
    %50 = vector.broadcast %cst_21 : bf16 to vector<4x16xbf16>
    %51 = tpu.concatenate %49, %50 in 1 : vector<4x240xbf16>, vector<4x16xbf16> -> vector<4x256xbf16>
    %c28 = arith.constant 28 : index
    %c0_22 = arith.constant 0 : index
    %52 = vector.load %arg7[%c28, %c0_22] : memref<36x256xbf16, #tpu.memory_space<vmem>>, vector<4x256xbf16>
    tpu.vector_store %arg7[%c28, %c0_22], %51 {strides = array<i32>} : memref<36x256xbf16, #tpu.memory_space<vmem>>, vector<4x256xbf16>,
    %53 = vector.extract_strided_slice %13 {offsets = [0, 17], sizes = [4, 239], strides = [1, 1]} : vector<4x256xbf16> to vector<4x239xbf16>
    %cst_23 = arith.constant 0.000000e+00 : bf16
    %54 = vector.broadcast %cst_23 : bf16 to vector<4x17xbf16>
    %55 = tpu.concatenate %53, %54 in 1 : vector<4x239xbf16>, vector<4x17xbf16> -> vector<4x256xbf16>
    %cst_24 = arith.constant 0.000000e+00 : bf16
    %56 = vector.broadcast %cst_24 : bf16 to vector<4x256xbf16>
    %57 = arith.select %10, %55, %56 : vector<4x256xi1>, vector<4x256xbf16>
    %c32 = arith.constant 32 : index
    %c0_25 = arith.constant 0 : index
    %58 = vector.load %arg7[%c32, %c0_25] : memref<36x256xbf16, #tpu.memory_space<vmem>>, vector<4x256xbf16>
    tpu.vector_store %arg7[%c32, %c0_25], %57 {strides = array<i32>} : memref<36x256xbf16, #tpu.memory_space<vmem>>, vector<4x256xbf16>,
    %c0_26 = arith.constant 0 : index
    %c0_27 = arith.constant 0 : index
    %59 = vector.load %arg2[%c0_26, %c0_27] : memref<4x36xbf16, #tpu.memory_space<vmem>>, vector<4x36xbf16>
    %c0_28 = arith.constant 0 : index
    %c0_29 = arith.constant 0 : index
    %60 = vector.load %arg7[%c0_28, %c0_29] : memref<36x256xbf16, #tpu.memory_space<vmem>>, vector<36x256xbf16>
    %cst_30 = arith.constant dense<0.000000e+00> : vector<4x256xf32>
    %61 = tpu.matmul %59, %60, %cst_30 {dimension_numbers = #tpu.dot_dimension_numbers<[1], [0], [0], [1], [0, 0, 1, 1], [], []>} : vector<4x36xbf16>, vector<36x256xbf16>, vector<4x256xf32> -> vector<4x256xf32>
    %c0_31 = arith.constant 0 : index
    %c0_32 = arith.constant 0 : index
    %62 = vector.load %arg3[%c0_31, %c0_32] : memref<4x1xf32, #tpu.memory_space<vmem>>, vector<4x1xf32>
    %63 = vector.broadcast %62 : vector<4x1xf32> to vector<4x256xf32>
    %64 = arith.addf %61, %63 : vector<4x256xf32>
    %cst_33 = arith.constant 0.000000e+00 : f32
    %65 = vector.broadcast %cst_33 : f32 to vector<4x256xf32>
    %66 = arith.maximumf %64, %65 : vector<4x256xf32>
    %67 = arith.truncf %66 : vector<4x256xf32> to vector<4x256xbf16>
    %cst_34 = arith.constant 0.000000e+00 : bf16
    %68 = vector.broadcast %cst_34 : bf16 to vector<4x17xbf16>
    %69 = vector.extract_strided_slice %67 {offsets = [0, 0], sizes = [4, 239], strides = [1, 1]} : vector<4x256xbf16> to vector<4x239xbf16>
    %70 = tpu.concatenate %68, %69 in 1 : vector<4x17xbf16>, vector<4x239xbf16> -> vector<4x256xbf16>
    %cst_35 = arith.constant 0.000000e+00 : bf16
    %71 = vector.broadcast %cst_35 : bf16 to vector<4x256xbf16>
    %72 = arith.select %6, %70, %71 : vector<4x256xi1>, vector<4x256xbf16>
    %c0_36 = arith.constant 0 : index
    %c0_37 = arith.constant 0 : index
    %73 = vector.load %arg7[%c0_36, %c0_37] : memref<36x256xbf16, #tpu.memory_space<vmem>>, vector<4x256xbf16>
    tpu.vector_store %arg7[%c0_36, %c0_37], %72 {strides = array<i32>} : memref<36x256xbf16, #tpu.memory_space<vmem>>, vector<4x256xbf16>,
    %cst_38 = arith.constant 0.000000e+00 : bf16
    %74 = vector.broadcast %cst_38 : bf16 to vector<4x16xbf16>
    %75 = vector.extract_strided_slice %67 {offsets = [0, 0], sizes = [4, 240], strides = [1, 1]} : vector<4x256xbf16> to vector<4x240xbf16>
    %76 = tpu.concatenate %74, %75 in 1 : vector<4x16xbf16>, vector<4x240xbf16> -> vector<4x256xbf16>
    %c4_39 = arith.constant 4 : index
    %c0_40 = arith.constant 0 : index
    %77 = vector.load %arg7[%c4_39, %c0_40] : memref<36x256xbf16, #tpu.memory_space<vmem>>, vector<4x256xbf16>
    tpu.vector_store %arg7[%c4_39, %c0_40], %76 {strides = array<i32>} : memref<36x256xbf16, #tpu.memory_space<vmem>>, vector<4x256xbf16>,
    %cst_41 = arith.constant 0.000000e+00 : bf16
    %78 = vector.broadcast %cst_41 : bf16 to vector<4x15xbf16>
    %79 = vector.extract_strided_slice %67 {offsets = [0, 0], sizes = [4, 241], strides = [1, 1]} : vector<4x256xbf16> to vector<4x241xbf16>
    %80 = tpu.concatenate %78, %79 in 1 : vector<4x15xbf16>, vector<4x241xbf16> -> vector<4x256xbf16>
    %cst_42 = arith.constant 0.000000e+00 : bf16
    %81 = vector.broadcast %cst_42 : bf16 to vector<4x256xbf16>
    %82 = arith.select %10, %80, %81 : vector<4x256xi1>, vector<4x256xbf16>
    %c8_43 = arith.constant 8 : index
    %c0_44 = arith.constant 0 : index
    %83 = vector.load %arg7[%c8_43, %c0_44] : memref<36x256xbf16, #tpu.memory_space<vmem>>, vector<4x256xbf16>
    tpu.vector_store %arg7[%c8_43, %c0_44], %82 {strides = array<i32>} : memref<36x256xbf16, #tpu.memory_space<vmem>>, vector<4x256xbf16>,
    %cst_45 = arith.constant 0.000000e+00 : bf16
    %84 = vector.broadcast %cst_45 : bf16 to vector<4x1xbf16>
    %85 = vector.extract_strided_slice %67 {offsets = [0, 0], sizes = [4, 255], strides = [1, 1]} : vector<4x256xbf16> to vector<4x255xbf16>
    %86 = tpu.concatenate %84, %85 in 1 : vector<4x1xbf16>, vector<4x255xbf16> -> vector<4x256xbf16>
    %cst_46 = arith.constant 0.000000e+00 : bf16
    %87 = vector.broadcast %cst_46 : bf16 to vector<4x256xbf16>
    %88 = arith.select %6, %86, %87 : vector<4x256xi1>, vector<4x256xbf16>
    %c12_47 = arith.constant 12 : index
    %c0_48 = arith.constant 0 : index
    %89 = vector.load %arg7[%c12_47, %c0_48] : memref<36x256xbf16, #tpu.memory_space<vmem>>, vector<4x256xbf16>
    tpu.vector_store %arg7[%c12_47, %c0_48], %88 {strides = array<i32>} : memref<36x256xbf16, #tpu.memory_space<vmem>>, vector<4x256xbf16>,
    %c16_49 = arith.constant 16 : index
    %c0_50 = arith.constant 0 : index
    %90 = vector.load %arg7[%c16_49, %c0_50] : memref<36x256xbf16, #tpu.memory_space<vmem>>, vector<4x256xbf16>
    tpu.vector_store %arg7[%c16_49, %c0_50], %67 {strides = array<i32>} : memref<36x256xbf16, #tpu.memory_space<vmem>>, vector<4x256xbf16>,
    %91 = vector.extract_strided_slice %67 {offsets = [0, 1], sizes = [4, 255], strides = [1, 1]} : vector<4x256xbf16> to vector<4x255xbf16>
    %cst_51 = arith.constant 0.000000e+00 : bf16
    %92 = vector.broadcast %cst_51 : bf16 to vector<4x1xbf16>
    %93 = tpu.concatenate %91, %92 in 1 : vector<4x255xbf16>, vector<4x1xbf16> -> vector<4x256xbf16>
    %cst_52 = arith.constant 0.000000e+00 : bf16
    %94 = vector.broadcast %cst_52 : bf16 to vector<4x256xbf16>
    %95 = arith.select %10, %93, %94 : vector<4x256xi1>, vector<4x256xbf16>
    %c20_53 = arith.constant 20 : index
    %c0_54 = arith.constant 0 : index
    %96 = vector.load %arg7[%c20_53, %c0_54] : memref<36x256xbf16, #tpu.memory_space<vmem>>, vector<4x256xbf16>
    tpu.vector_store %arg7[%c20_53, %c0_54], %95 {strides = array<i32>} : memref<36x256xbf16, #tpu.memory_space<vmem>>, vector<4x256xbf16>,
    %97 = vector.extract_strided_slice %67 {offsets = [0, 15], sizes = [4, 241], strides = [1, 1]} : vector<4x256xbf16> to vector<4x241xbf16>
    %cst_55 = arith.constant 0.000000e+00 : bf16
    %98 = vector.broadcast %cst_55 : bf16 to vector<4x15xbf16>
    %99 = tpu.concatenate %97, %98 in 1 : vector<4x241xbf16>, vector<4x15xbf16> -> vector<4x256xbf16>
    %cst_56 = arith.constant 0.000000e+00 : bf16
    %100 = vector.broadcast %cst_56 : bf16 to vector<4x256xbf16>
    %101 = arith.select %6, %99, %100 : vector<4x256xi1>, vector<4x256xbf16>
    %c24_57 = arith.constant 24 : index
    %c0_58 = arith.constant 0 : index
    %102 = vector.load %arg7[%c24_57, %c0_58] : memref<36x256xbf16, #tpu.memory_space<vmem>>, vector<4x256xbf16>
    tpu.vector_store %arg7[%c24_57, %c0_58], %101 {strides = array<i32>} : memref<36x256xbf16, #tpu.memory_space<vmem>>, vector<4x256xbf16>,
    %103 = vector.extract_strided_slice %67 {offsets = [0, 16], sizes = [4, 240], strides = [1, 1]} : vector<4x256xbf16> to vector<4x240xbf16>
    %cst_59 = arith.constant 0.000000e+00 : bf16
    %104 = vector.broadcast %cst_59 : bf16 to vector<4x16xbf16>
    %105 = tpu.concatenate %103, %104 in 1 : vector<4x240xbf16>, vector<4x16xbf16> -> vector<4x256xbf16>
    %c28_60 = arith.constant 28 : index
    %c0_61 = arith.constant 0 : index
    %106 = vector.load %arg7[%c28_60, %c0_61] : memref<36x256xbf16, #tpu.memory_space<vmem>>, vector<4x256xbf16>
    tpu.vector_store %arg7[%c28_60, %c0_61], %105 {strides = array<i32>} : memref<36x256xbf16, #tpu.memory_space<vmem>>, vector<4x256xbf16>,
    %107 = vector.extract_strided_slice %67 {offsets = [0, 17], sizes = [4, 239], strides = [1, 1]} : vector<4x256xbf16> to vector<4x239xbf16>
    %cst_62 = arith.constant 0.000000e+00 : bf16
    %108 = vector.broadcast %cst_62 : bf16 to vector<4x17xbf16>
    %109 = tpu.concatenate %107, %108 in 1 : vector<4x239xbf16>, vector<4x17xbf16> -> vector<4x256xbf16>
    %cst_63 = arith.constant 0.000000e+00 : bf16
    %110 = vector.broadcast %cst_63 : bf16 to vector<4x256xbf16>
    %111 = arith.select %10, %109, %110 : vector<4x256xi1>, vector<4x256xbf16>
    %c32_64 = arith.constant 32 : index
    %c0_65 = arith.constant 0 : index
    %112 = vector.load %arg7[%c32_64, %c0_65] : memref<36x256xbf16, #tpu.memory_space<vmem>>, vector<4x256xbf16>
    tpu.vector_store %arg7[%c32_64, %c0_65], %111 {strides = array<i32>} : memref<36x256xbf16, #tpu.memory_space<vmem>>, vector<4x256xbf16>,
    %c0_66 = arith.constant 0 : index
    %c0_67 = arith.constant 0 : index
    %113 = vector.load %arg4[%c0_66, %c0_67] : memref<4x36xbf16, #tpu.memory_space<vmem>>, vector<4x36xbf16>
    %c0_68 = arith.constant 0 : index
    %c0_69 = arith.constant 0 : index
    %114 = vector.load %arg7[%c0_68, %c0_69] : memref<36x256xbf16, #tpu.memory_space<vmem>>, vector<36x256xbf16>
    %cst_70 = arith.constant dense<0.000000e+00> : vector<4x256xf32>
    %115 = tpu.matmul %113, %114, %cst_70 {dimension_numbers = #tpu.dot_dimension_numbers<[1], [0], [0], [1], [0, 0, 1, 1], [], []>} : vector<4x36xbf16>, vector<36x256xbf16>, vector<4x256xf32> -> vector<4x256xf32>
    %c0_71 = arith.constant 0 : index
    %c0_72 = arith.constant 0 : index
    %116 = vector.load %arg5[%c0_71, %c0_72] : memref<4x1xf32, #tpu.memory_space<vmem>>, vector<4x1xf32>
    %117 = vector.broadcast %116 : vector<4x1xf32> to vector<4x256xf32>
    %118 = arith.addf %115, %117 : vector<4x256xf32>
    %119 = arith.addf %118, %12 : vector<4x256xf32>
    %cst_73 = arith.constant 0.000000e+00 : f32
    %120 = vector.broadcast %cst_73 : f32 to vector<4x256xf32>
    %121 = arith.maximumf %119, %120 : vector<4x256xf32>
    %c0_74 = arith.constant 0 : index
    %c0_75 = arith.constant 0 : index
    %c0_76 = arith.constant 0 : index
    %122 = vector.load %arg6[%c0_74, %c0_75, %c0_76] : memref<1x4x256xf32, #tpu.memory_space<vmem>>, vector<1x4x256xf32>
    %123 = vector.shape_cast %122 : vector<1x4x256xf32> to vector<4x256xf32>
    %124 = vector.shape_cast %121 : vector<4x256xf32> to vector<1x4x256xf32>
    tpu.vector_store %arg6[%c0_74, %c0_75, %c0_76], %124 {strides = array<i32>} : memref<1x4x256xf32, #tpu.memory_space<vmem>>, vector<1x4x256xf32>,
    return
  }
  func.func @transform_0(%arg0: i32) -> (i32, i32, i32) {
    %c0_i32 = arith.constant 0 : i32
    %c0_i32_0 = arith.constant 0 : i32
    %c0_i32_1 = arith.constant 0 : i32
    return %arg0, %c0_i32, %c0_i32_0 : i32, i32, i32
  }
  func.func @transform_1(%arg0: i32) -> (i32, i32) {
    %c0_i32 = arith.constant 0 : i32
    %c0_i32_0 = arith.constant 0 : i32
    %c0_i32_1 = arith.constant 0 : i32
    return %c0_i32, %c0_i32_0 : i32, i32
  }
  func.func @transform_2(%arg0: i32) -> (i32, i32) {
    %c0_i32 = arith.constant 0 : i32
    %c0_i32_0 = arith.constant 0 : i32
    %c0_i32_1 = arith.constant 0 : i32
    return %c0_i32, %c0_i32_0 : i32, i32
  }
  func.func @transform_3(%arg0: i32) -> (i32, i32) {
    %c0_i32 = arith.constant 0 : i32
    %c0_i32_0 = arith.constant 0 : i32
    %c0_i32_1 = arith.constant 0 : i32
    return %c0_i32, %c0_i32_0 : i32, i32
  }
  func.func @transform_4(%arg0: i32) -> (i32, i32) {
    %c0_i32 = arith.constant 0 : i32
    %c0_i32_0 = arith.constant 0 : i32
    %c0_i32_1 = arith.constant 0 : i32
    return %c0_i32, %c0_i32_0 : i32, i32
  }
  func.func @transform_5(%arg0: i32) -> (i32, i32, i32) {
    %c0_i32 = arith.constant 0 : i32
    %c0_i32_0 = arith.constant 0 : i32
    %c0_i32_1 = arith.constant 0 : i32
    return %arg0, %c0_i32, %c0_i32_0 : i32, i32, i32
  }
}

</mosaic_0001>

<bundles_post_ra>
// kernel: tpu_custom_call.1
= control target key start
LH: loop header
LB: loop body
LE: loop exit
PB: predicated region body
PF: predicated region fallthrough
CT: control target
= control target key end

     0   :  { %10 = vsyncpa [#allocation4], 0  ;;  %s1399_s0 = inlined_call_operand.hbm [shape: f32[2,4,256], index: 0, kind: input, shape index: {}]   ;;  %s1400_s1 = inlined_call_operand.vmem [shape: bf16[4,36], index: 1, kind: input, shape index: {}]   ;;  %s1401_s2 = inlined_call_operand.vmem [shape: f32[4,1], index: 2, kind: input, shape index: {}]   ;;  %s1402_s3 = inlined_call_operand.vmem [shape: bf16[4,36], index: 3, kind: input, shape index: {}]   ;;  %s1403_s4 = inlined_call_operand.vmem [shape: f32[4,1], index: 4, kind: input, shape index: {}]   ;;  %s1404_s5 = inlined_call_operand.hbm [shape: f32[2,4,256], index: 5, kind: output, shape index: {}]  }
   0x1   :  { %12 = vsyncpa [#allocation4 + $0x1], 0 }
   0x2   :  { %13 = vsyncpa [#allocation5], 0 }
   0x3   :  { %15 = vsyncpa [#allocation5 + $0x1], 0  ;;  %s1118_s18 = smov 0   ;;  %s1120_s19 = smov 0  }
   0x4   :  { %s1122_s20 = smov 0   ;;  %s1124_s21 = smov 0  }
   0x5 LB: > { %s1139_s22 = sadd.s32 4294967295, %s1077_s21   ;;  %s864_s23 = sadd.s32 4294967294, %s1077_s21   ;;  %s1077_s21 = sphi %s1124_s21, %s1422_s21   ;;  %s1073_s20 = sphi %s1122_s20, %s1421_s20   ;;  %s1069_s19 = sphi %s1120_s19, %s1420_s19   ;;  %s1065_s18 = sphi %s1118_s18, %s1419_s18  }
   0x6   : > { %s1143_s24 = sadd.s32 1, %s1077_s21   ;;  %s28_s25 = sadd.s32 1, %s1073_s20 }
   0x7   : > { %s25_s26 = ssub.s32 %s1077_s21, %s1143_s24  ;;  %p35_p0 = scmp.ne.s32.totalorder %s1073_s20, %s1069_s19 }
   0x8   : > { %p26_p1 = scmp.eq.s32.totalorder %s25_s26, 0  ;;  %p36_p2 = scmp.eq.s32.totalorder %s1077_s21, 0 }
   0x9   : > { %p41_p3 = scmp.ne.s32.totalorder %s1069_s19, %s1065_s18  ;;  %p42_p4 = scmp.eq.s32.totalorder %s1139_s22, 0 }
   0xa   : > { %s1155_s27 = scalar_select %p26_p1, %s1073_s20, %s28_s25  }
   0xb   : > { %p1157_p5 = por %p36_p2, %p35_p0  ;;  %p1161_p6 = por %p42_p4, %p41_p3 }
   0xc   : > { %p149_p7 = scmp.eq.s32.totalorder %s1139_s22, 1  ;;  %p155_p8 = scmp.eq.s32.totalorder %s864_s23, 1 }
   0xd   : > { %p936_p10 = scmp.lt.s32.totalorder %s1077_s21, 2  ;;  %s187_s7 = sand.u32 1, %s1073_s20  }
   0xe   : > { %p1168_p11 = por %p149_p7, %p35_p0  ;;  %p1172_p12 = por %p155_p8, %p41_p3 }
   0xf   : > { %s914_s8 = sshll.u32 %s1077_s21, 3  ;;  %s867_s9 = sshll.u32 %s187_s7, 3 }
  0x10   : > { %s196_s12 = scalar_lea.hbm %s1399_s0, %s914_s8  ;;  %s191_s14 = scalar_lea.vmem [#allocation3], %s867_s9 }
  0x11   : > { %s198_s13 = sshll.u32 %s196_s12, 4  ;;  %s200_s15 = sshll.u32 %s191_s14, 4  ;;  %s199_s13 = int_to_ptr.hbm [resolvable:$true] %s198_s13  ;;  %s201_s15 = int_to_ptr.vmem [resolvable:$true] %s200_s15 }
  0x12   : > { %p1183_p13 = pnand %p936_p10, %p1157_p5  ;;  %p870_p0 = scmp.ge.s32.totalorder %s1077_s21, 1 }
  0x13   : > { %p205_p1 = scmp.lt.s32.totalorder %s1077_s21, 3  ;;  %s188_s17 = scalar_lea.sflag [#allocation4], %s187_s7 }
  0x14   : > { %s981_s23 = sshra.s32 %s199_s13, 4  ;;  %p985_p3 = pneg %p1183_p13  ;;  %s982_s23 = int_to_ptr.hbm [resolvable:$true] %s981_s23 }
  0x15   : > { %s983_s25 = scalar_lea.hbm %s982_s23, 8  ;;  %s988_s28 = scalar_lea.hbm %s1399_s0, 16 }
  0x16   : > { %p984_p2 = scmp.ne.s32.totalorder %s982_s23, %s983_s25  ;;  %p989_p5 = scmp.lt.s32.totalorder %s982_s23, %s1399_s0 }
  0x17   : > { %p990_p8 = scmp.lt.s32.totalorder %s988_s28, %s983_s25 }
  0x18   : > { %p986_p4 = pnand %p985_p3, %p984_p2 }
  0x19   : > { %p991_p10 = por %p990_p8, %p989_p5 }
  0x1a   : > { %p987_p7 = pneg %p986_p4 }
  0x1c   : > { %p992_p9 = pnand %p991_p10, %p987_p7 }
  0x1e   : > { %995 = shalt.err (!%p992_p9)
}
  0x1f   : > { %931 = dma.hbm_to_vmem [thread:$0]  (!%p1183_p13), %s199_s13, 128, %s201_s15, %s188_s17  }
  0x20   : > { %p206_p2 = pnand %p870_p0, %p205_p1 }
  0x21   : > { %s1204_s7 = sand.u32 (!%p206_p2), 1, %s1069_s19  }
  0x22   : > { %209 = sbr.rel (%p206_p2) target bundleno = 676 (0x2a4), region = 40  ;;  %s871_s11 = sshll.u32 (!%p206_p2), %s1204_s7, 3 }
  0x23   : > { %s212_s12 = scalar_lea.sflag (!%p206_p2), [#allocation4], %s1204_s7  ;;  %s215_s14 = scalar_lea.vmem (!%p206_p2), [#allocation3], %s871_s11 }
  0x27   : > { %1056 = dma.done.wait (%p1161_p6), %s212_s12, 128  }
  0x28   : > { %1058 = vsyncadd (%p1161_p6), %s212_s12, 4294967168  ;;  %v263_v0 = vld [vmem:[%s215_s14] sm:$0xff]  ;;  %s1079_s13 = smov 127   ;;  %s1080_s15 = smov 111   ;;  %v1087_v8 = vmov 0   ;;  %v246_v9 = vlaneseq  ;;  %vm436_vm0 = vcmask 916480  }
  0x29   : > { %265 = vst [vmem:[#allocation1] ss:$2 sm:$0xff] %v263_v0  ;;  %s1081_s16 = smov 112   ;;  %s1082_s29 = smov 113   ;;  %979 = vset.pattern.permute.xlu1 %v1087_v8  ;;  %980 = vset.pattern.permute.xlu0 %v1087_v8  ;;  %v294_v26 = vunpack.c.l.b16 %v1087_v8  ;;  %v295_v27 = vunpack.c.h.b16 %v1087_v8  ;;  %vm395_vm12 = vcmask 1039360   ;;  %vm452_vm13 = vcmask 908288  }
  0x2a   : > { %s1083_s17 = smov 1   ;;  %s1084_s23 = smov 16   ;;  %v247_v10 = vand.u32 127, %v246_v9  ;;  %v689_v38 = vld [vmem:[%s1402_s3] sm:$0x3] }
  0x2b   : > { %s1085_s25 = smov 17   ;;  %s1086_s26 = smov 15  }
  0x2c   : > { %v248_v12 = vadd.s32 128, %v247_v10  ;;  %v249_v13 = vand.u32 15, %v247_v10  ;;  %s1031_s12 = scalar_lea.hbm %s1404_s5, 16 }
  0x2e   : > { %v250_v14 = vand.u32 15, %v248_v12  ;;  %vm257_vm1 = vcmp.ne.s32.totalorder %v249_v13, 15  ;;  %vm251_vm4 = vcmp.ne.s32.totalorder %v249_v13, 0 }
  0x30   : > { %v266_v1 = vld.sshfl [vmem:[#allocation1] sm:$0xff pattern:$0x75316420]  ;;  %v267_v2 = vld.sshfl [vmem:[#allocation1 + $0x8] sm:$0xff pattern:$0x75316420] }
  0x31   : > { %v270_v3 = vpack.c.bf16 %v267_v2, %v266_v1  ;;  %761 = vst [vmem:[#allocation1] ss:$2 sm:$0xff] %v263_v0  ;;  %vm258_vm2 = vcmp.ne.s32.totalorder %v250_v14, 15  ;;  %vm252_vm5 = vcmp.ne.s32.totalorder %v250_v14, 0 }
  0x32   : > { %vm342_vm3 = vmpackc.low %vm258_vm2, %vm257_vm1 }
  0x33   : > { %v272_v4 = vunpack.c.l.b16 %v270_v3  ;;  %390 = vst [vmem:[#allocation2 + $0x10] sm:$0x33] %v270_v3  ;;  %v273_v6 = vunpack.c.h.b16 %v270_v3  ;;  %v343_v22 = vsel %vm342_vm3, 65537, %v1087_v8  ;;  %vm288_vm6 = vmpackc.low %vm252_vm5, %vm251_vm4  ;;  %vm416_vm5 = vcmask 924672  }
  0x34   : > { %v344_v23 = vperm.slane %v343_v22, 0  ;;  %v345_v24 = vperm.slane %v343_v22, 4  ;;  %v289_v25 = vsel %vm288_vm6, 65537, %v1087_v8 }
  0x35   : > { %v274_v5 = vpack.c.b16 %v272_v4, %v272_v4  ;;  %v275_v7 = vpack.c.b16 %v273_v6, %v273_v6  ;;  %v291_v34 = vperm.slane %v289_v25, 4  ;;  %v290_v37 = vperm.slane %v289_v25, 0 }
  0x36   : > { %v346_v28 = vunpack.c.l.b16 %v344_v23  ;;  %v347_v29 = vunpack.c.h.b16 %v344_v23  ;;  %v353_v30 = vunpack.c.l.b16 %v345_v24  ;;  %v354_v33 = vunpack.c.h.b16 %v345_v24 }
  0x37   : > { %391 = vrot.lane.b32.xlu1 %v274_v5, %s1079_s13  ;;  %448 = vrot.lane.b32.xlu0 %v274_v5, %s1080_s15  ;;  %v299_v35 = vunpack.c.l.b16 %v291_v34  ;;  %v300_v36 = vunpack.c.h.b16 %v291_v34  ;;  %v292_v42 = vunpack.c.l.b16 %v290_v37  ;;  %v293_v43 = vunpack.c.h.b16 %v290_v37 }
  0x38   : > { %432 = vrot.lane.b32.xlu2 %v274_v5, %s1081_s16  ;;  %vm350_vm7 = vcmp.ne.s32.totalorder %v346_v28, %v294_v26  ;;  %vm351_vm8 = vcmp.ne.s32.totalorder %v347_v29, %v295_v27  ;;  %vm357_vm9 = vcmp.ne.s32.totalorder %v353_v30, %v294_v26  ;;  %vm358_vm10 = vcmp.ne.s32.totalorder %v354_v33, %v295_v27 }
  0x39   : > { %vm1232_vm11 = vmpackc.low %vm351_vm8, %vm350_vm7  ;;  %vm303_vm15 = vcmp.ne.s32.totalorder %v299_v35, %v294_v26  ;;  %vm304_vm1 = vcmp.ne.s32.totalorder %v300_v36, %v295_v27  ;;  %vm296_vm2 = vcmp.ne.s32.totalorder %v292_v42, %v294_v26  ;;  %vm297_vm3 = vcmp.ne.s32.totalorder %v293_v43, %v295_v27  ;;  %v474_v27 = vld [vmem:[%s1401_s2] sm:$0xf] }
  0x3a   : > { %vm1236_vm14 = vmpackc.low %vm358_vm10, %vm357_vm9  ;;  %vm373_vm7 = vcmask 7168   ;;  %vm319_vm8 = vcmask 130048   ;;  %vm509_vm9 = vcmask 1041408   ;;  %vm280_vm10 = vcmask 138240  }
  0x3b   : > { %vm1254_vm4 = vmpackc.low %vm304_vm1, %vm303_vm15  ;;  %vm335_vm15 = vcmask 121856   ;;  %vm505_vm1 = vcmask 293888  }
  0x3c   : > { %vm1258_vm6 = vmpackc.low %vm297_vm3, %vm296_vm2 }
  0x3f   : > { %393 = vrot.lane.b32.xlu1 %v275_v7, %s1079_s13  ;;  %450 = vrot.lane.b32.xlu0 %v275_v7, %s1080_s15 }
  0x40   : > { %434 = vrot.lane.b32.xlu2 %v275_v7, %s1081_s16 }
  0x47   : > { %414 = vrot.lane.b32.xlu1 %v275_v7, %s1082_s29  ;;  %412 = vrot.lane.b32.xlu0 %v274_v5, %s1082_s29 }
  0x48   : > { %369 = vrot.lane.b32.xlu2 %v274_v5, %s1083_s17 }
  0x4f   : > { %315 = vrot.lane.b32.xlu1 %v274_v5, %s1084_s23  ;;  %371 = vrot.lane.b32.xlu0 %v275_v7, %s1083_s17 }
  0x50   : > { %317 = vrot.lane.b32.xlu2 %v275_v7, %s1084_s23 }
  0x57   : > { %278 = vrot.lane.b32.xlu1 %v275_v7, %s1085_s25  ;;  %276 = vrot.lane.b32.xlu0 %v274_v5, %s1085_s25 }
  0x58   : > { %331 = vrot.lane.b32.xlu2 %v274_v5, %s1086_s26 }
  0x5f   : > { %333 = vrot.lane.b32.xlu0 %v275_v7, %s1086_s26  ;;  %477 = vperm.xlu1 %979, %v474_v27  }
  0x92   : > { %v433_v11 = vpop.permute.xlu2 %432 }
  0x9a   : > { %v435_v15 = vpop.permute.xlu2 %434 }
  0x9b   : > { %v437_v16 = vsel %vm436_vm0, %v433_v11, %v435_v15  ;;  %v440_v17 = vsel %vm436_vm0, %v435_v15, 0 }
  0x9c   : > { %v442_v18 = vunpack.c.l.b16 %v437_v16  ;;  %v443_v19 = vunpack.c.l.b16 %v440_v17 }
  0x9e   : > { %v444_v20 = vpack.c.b16 %v443_v19, %v442_v18 }
  0xa0   : > { %v445_v21 = vrot.slane %v444_v20, 6 }
  0xa2   : > { %447 = vst [vmem:[#allocation2 + $0x18] sm:$0xcc] %v445_v21  ;;  %v370_v56 = vpop.permute.xlu2 %369 }
  0xa3   : > { %v378_v4 = vsel %vm373_vm7, 0, %v370_v56 }
  0xa4   : > { %v380_v8 = vsel %vm1258_vm6, %v378_v4, 0 }
  0xa5   : > { %v384_v13 = vunpack.c.l.b16 %v380_v8 }
  0xa9   : > { %v392_v31 = vpop.permute.xlu1 %391  ;;  %v449_v32 = vpop.permute.xlu0 %448 }
  0xaa   : > { %v318_v9 = vpop.permute.xlu2 %317 }
  0xb1   : > { %v394_v40 = vpop.permute.xlu1 %393  ;;  %v451_v41 = vpop.permute.xlu0 %450 }
  0xb2   : > { %v396_v44 = vsel %vm395_vm12, %v392_v31, %v394_v40  ;;  %v400_v45 = vsel %vm395_vm12, %v394_v40, 0  ;;  %v453_v46 = vsel %vm452_vm13, %v449_v32, %v451_v41  ;;  %v457_v47 = vsel %vm452_vm13, %v451_v41, 0  ;;  %v332_v40 = vpop.permute.xlu2 %331 }
  0xb3   : > { %v402_v48 = vsel %vm1232_vm11, %v396_v44, 0  ;;  %v403_v49 = vsel %vm1236_vm14, %v400_v45, 0  ;;  %v459_v50 = vsel %vm1232_vm11, %v453_v46, 0  ;;  %v460_v51 = vsel %vm1236_vm14, %v457_v47, 0 }
  0xb4   : > { %v406_v52 = vunpack.c.l.b16 %v402_v48  ;;  %v407_v53 = vunpack.c.l.b16 %v403_v49  ;;  %v463_v54 = vunpack.c.l.b16 %v459_v50  ;;  %v464_v55 = vunpack.c.l.b16 %v460_v51 }
  0xb5   : > { %v340_v49 = vsel %vm335_vm15, 0, %v332_v40 }
  0xb6   : > { %v408_v57 = vpack.c.b16 %v407_v53, %v406_v52  ;;  %v465_v58 = vpack.c.b16 %v464_v55, %v463_v54  ;;  %v360_v51 = vsel %vm1232_vm11, %v340_v49, 0 }
  0xb7   : > { %v364_v53 = vunpack.c.l.b16 %v360_v51 }
  0xb8   : > { %v409_v60 = vrot.slane %v408_v57, 6  ;;  %467 = vst [vmem:[#allocation2 + $0x20] sm:$0x33] %v465_v58 }
  0xb9   : > { %v415_v62 = vpop.permute.xlu1 %414  ;;  %v413_v63 = vpop.permute.xlu0 %412 }
  0xba   : > { %411 = vst [vmem:[#allocation2 + $0x10] sm:$0xcc] %v409_v60  ;;  %v421_v0 = vsel %vm416_vm5, %v415_v62, 0  ;;  %v417_v1 = vsel %vm416_vm5, %v413_v63, %v415_v62 }
  0xbb   : > { %v424_v2 = vsel %vm1254_vm4, %v421_v0, 0  ;;  %v423_v3 = vsel %vm1258_vm6, %v417_v1, 0 }
  0xbc   : > { %v428_v5 = vunpack.c.l.b16 %v424_v2  ;;  %v427_v6 = vunpack.c.l.b16 %v423_v3  ;;  %v468_v2 = vld [vmem:[%s1400_s1] sm:$0x3] }
  0xbe   : > { %v429_v7 = vpack.c.b16 %v428_v5, %v427_v6 }
  0xbf   : > { %v473_v10 = vld [vmem:[#allocation2 + $0x20] sm:$0x33] }
  0xc0   : > { %431 = vst [vmem:[#allocation2 + $0x18] sm:$0x33] %v429_v7  ;;  %v493_v11 = vunpack.c.l.b16 %v473_v10  ;;  %v494_v12 = vunpack.c.h.b16 %v473_v10 }
  0xc1   : > { %v316_v14 = vpop.permute.xlu1 %315  ;;  %v372_v15 = vpop.permute.xlu0 %371  ;;  %v883_v30 = vld [vmem:[#allocation2 + $0x10] sm:$0xf]  ;;  %v917_v32 = vld [vmem:[#allocation2 + $0x14] sm:$0xf] }
  0xc2   : > { %v323_v16 = vsel %vm319_vm8, 0, %v316_v14  ;;  %v374_v17 = vsel %vm373_vm7, %v370_v56, %v372_v15  ;;  %v499_v18 = vpack.c.b16 %v493_v11, %v493_v11  ;;  %v500_v19 = vpack.c.b16 %v494_v12, %v494_v12 }
  0xc3   : > { %v325_v20 = vunpack.c.l.b16 %v323_v16  ;;  %v381_v21 = vsel %vm1254_vm4, %v374_v17, 0  ;;  %v320_v22 = vsel %vm319_vm8, %v316_v14, %v318_v9 }
  0xc4   : > { %v385_v23 = vunpack.c.l.b16 %v381_v21  ;;  %v511_v24 = vsel %vm509_vm9, %v499_v18, 0  ;;  %v514_v25 = vsel %vm509_vm9, %v500_v19, 0  ;;  %v326_v26 = vunpack.c.l.b16 %v320_v22 }
  0xc5   : > { %521 = vmatpush.bf16.msra.mxu0 %v511_v24  ;;  %534 = vmatpush.bf16.msra.mxu1 %v514_v25 }
  0xc6   : > { %v386_v28 = vpack.c.b16 %v385_v23, %v384_v13  ;;  %v327_v29 = vpack.c.b16 %v326_v26, %v325_v20 }
  0xc7   : > { %v918_v31 = vld [vmem:[#allocation2 + $0x14] sm:$0xf0]  ;;  %v885_v33 = vld [vmem:[#allocation2 + $0x18] sm:$0xf0] }
  0xc8   : > { %v387_v34 = vrot.slane %v386_v28, 6  ;;  %v328_v35 = vrot.slane %v327_v29, 6  ;;  %v884_v36 = vor.u32 %v918_v31, %v883_v30  ;;  %v888_v37 = vor.u32 %v917_v32, %v885_v33 }
  0xc9   : > { %v279_v41 = vpop.permute.xlu1 %278  ;;  %v277_v42 = vpop.permute.xlu0 %276 }
  0xca   : > { %389 = vst [vmem:[#allocation2 + $0x8] sm:$0xcc] %v387_v34  ;;  %v281_v43 = vsel %vm280_vm10, %v277_v42, %v279_v41  ;;  %v286_v44 = vsel %vm280_vm10, 0, %v277_v42  ;;  %522 = vmatpush.bf16.msra.mxu0 %v884_v36  ;;  %535 = vmatpush.bf16.msra.mxu1 %v888_v37 }
  0xcb   : > { %330 = vst [vmem:[#allocation2] sm:$0xcc] %v328_v35  ;;  %v306_v45 = vsel %vm1258_vm6, %v286_v44, 0  ;;  %v307_v46 = vsel %vm1254_vm4, %v281_v43, 0 }
  0xcc   : > { %v310_v47 = vunpack.c.l.b16 %v306_v45  ;;  %v311_v48 = vunpack.c.l.b16 %v307_v46 }
  0xce   : > { %v312_v50 = vpack.c.b16 %v311_v48, %v310_v47 }
  0xd0   : > { %314 = vst [vmem:[#allocation2] sm:$0x33] %v312_v50 }
  0xd1   : > { %v334_v52 = vpop.permute.xlu0 %333  ;;  %v478_v3 = vpop.permute.xlu1 %477 }
  0xd2   : > { %v336_v54 = vsel %vm335_vm15, %v332_v40, %v334_v52 }
  0xd3   : > { %v361_v55 = vsel %vm1236_vm14, %v336_v54, 0 }
  0xd4   : > { %v365_v56 = vunpack.c.l.b16 %v361_v55 }
  0xd6   : > { %v366_v57 = vpack.c.b16 %v365_v56, %v364_v53 }
  0xd7   : > { %v875_v58 = vld [vmem:[#allocation2] sm:$0xf]  ;;  %v915_v62 = vld [vmem:[#allocation2 + $0x4] sm:$0xf] }
  0xd8   : > { %368 = vst [vmem:[#allocation2 + $0x8] sm:$0x33] %v366_v57 }
  0xdf   : > { %v916_v60 = vld [vmem:[#allocation2 + $0x4] sm:$0xf0]  ;;  %v877_v63 = vld [vmem:[#allocation2 + $0x8] sm:$0xf0] }
  0xe0   : > { %v876_v0 = vor.u32 %v916_v60, %v875_v58  ;;  %v880_v1 = vor.u32 %v915_v62, %v877_v63 }
  0xe2   : > { %523 = vmatpush.bf16.msra.mxu0 %v876_v0  ;;  %536 = vmatpush.bf16.msra.mxu1 %v880_v1 }
  0xe5   : > { %889 = vmatmul.msk.bf16.vlgmr.msra.gmra.mxu0 %vm505_vm1, %v468_v2  ;;  %890 = vmatmul.msk.bf16.vlgmr.msra.gmra.mxu1 %vm505_vm1, %v468_v2 }
 0x162   : > { %v525_v4 = vpop.f32.mrf.mxu0  ;;  %v538_v5 = vpop.f32.mrf.mxu1 }
 0x163   : > { %v526_v6 = vadd.f32 %v525_v4, %v478_v3  ;;  %v539_v7 = vadd.f32 %v538_v5, %v478_v3 }
 0x165   : > { %v542_v8 = vmax.f32 %v526_v6, 0.0  ;;  %v543_v9 = vmax.f32 %v539_v7, 0.0 }
 0x167   : > { %v544_v10 = vpack.c.bf16 %v543_v9, %v542_v8  ;;  %v695_v8 = vld [vmem:[%s1403_s4] sm:$0xf] }
 0x169   : > { %v546_v11 = vunpack.c.l.b16 %v544_v10  ;;  %v547_v12 = vunpack.c.h.b16 %v544_v10  ;;  %619 = vst [vmem:[#allocation2 + $0x10] sm:$0x33] %v544_v10 }
 0x16a   : > { %v527_v13 = vpop.f32.mrf.mxu0  ;;  %v540_v14 = vpop.f32.mrf.mxu1 }
 0x16b   : > { %v548_v15 = vpack.c.b16 %v546_v11, %v546_v11  ;;  %v549_v16 = vpack.c.b16 %v547_v12, %v547_v12 }
 0x16d   : > { %673 = vrot.lane.b32.xlu0 %v549_v16, %s1080_s15  ;;  %620 = vrot.lane.b32.xlu1 %v548_v15, %s1079_s13 }
 0x16e   : > { %671 = vrot.lane.b32.xlu2 %v548_v15, %s1080_s15 }
 0x175   : > { %657 = vrot.lane.b32.xlu0 %v548_v15, %s1081_s16  ;;  %659 = vrot.lane.b32.xlu1 %v549_v16, %s1081_s16  ;;  %s923_s16 = sshll.u32 %s1139_s22, 3  ;;  %s778_s22 = scalar_lea.sflag [#allocation5], %s1204_s7 }
 0x176   : > { %622 = vrot.lane.b32.xlu2 %v549_v16, %s1079_s13 }
 0x17d   : > { %641 = vrot.lane.b32.xlu0 %v549_v16, %s1082_s29  ;;  %600 = vrot.lane.b32.xlu1 %v548_v15, %s1083_s17 }
 0x17e   : > { %639 = vrot.lane.b32.xlu2 %v548_v15, %s1082_s29 }
 0x185   : > { %568 = vrot.lane.b32.xlu0 %v548_v15, %s1084_s23  ;;  %570 = vrot.lane.b32.xlu1 %v549_v16, %s1084_s23  ;;  %s789_s23 = scalar_lea.hbm %s1404_s5, %s923_s16 }
 0x186   : > { %602 = vrot.lane.b32.xlu2 %v549_v16, %s1083_s17  ;;  %s793_s8 = sshll.u32 %s789_s23, 4  ;;  %s794_s8 = int_to_ptr.hbm [resolvable:$true] %s793_s8 }
 0x187   : > { %s1025_s28 = sshra.s32 %s794_s8, 4  ;;  %s1026_s28 = int_to_ptr.hbm [resolvable:$true] %s1025_s28 }
 0x188   : > { %s1027_s9 = scalar_lea.hbm %s1026_s28, 8  ;;  %p1032_p0 = scmp.lt.s32.totalorder %s1026_s28, %s1404_s5 }
 0x189   : > { %p1028_p6 = scmp.ne.s32.totalorder %s1026_s28, %s1027_s9  ;;  %p1033_p1 = scmp.lt.s32.totalorder %s1031_s12, %s1027_s9 }
 0x18b   : > { %p1029_p9 = pnand %p1028_p6, %p1168_p11  ;;  %p1034_p3 = por %p1033_p1, %p1032_p0 }
 0x18d   : > { %552 = vrot.lane.b32.xlu0 %v549_v16, %s1085_s25  ;;  %582 = vrot.lane.b32.xlu1 %v548_v15, %s1086_s26  ;;  %p1030_p13 = pneg %p1029_p9 }
 0x18e   : > { %550 = vrot.lane.b32.xlu2 %v548_v15, %s1085_s25  ;;  %s242_s25 = scalar_lea.vmem [#allocation6], %s871_s11 }
 0x18f   : > { %p1035_p4 = pnand %p1034_p3, %p1030_p13 }
 0x195   : > { %698 = vperm.xlu0 %980, %v695_v8  }
 0x196   : > { %584 = vrot.lane.b32.xlu2 %v549_v16, %s1086_s26  ;;  %s791_s26 = sshll.u32 %s242_s25, 4  ;;  %s792_s26 = int_to_ptr.vmem [resolvable:$true] %s791_s26 }
 0x1c8   : > { %v672_v17 = vpop.permute.xlu2 %671 }
 0x1d0   : > { %v623_v18 = vpop.permute.xlu2 %622 }
 0x1d1   : > { %v627_v19 = vsel %vm395_vm12, %v623_v18, 0 }
 0x1d2   : > { %v630_v20 = vsel %vm1236_vm14, %v627_v19, 0 }
 0x1d3   : > { %v634_v30 = vunpack.c.l.b16 %v630_v20 }
 0x1d8   : > { %v640_v23 = vpop.permute.xlu2 %639 }
 0x1df   : > { %v674_v21 = vpop.permute.xlu0 %673  ;;  %v621_v22 = vpop.permute.xlu1 %620 }
 0x1e0   : > { %v675_v24 = vsel %vm452_vm13, %v672_v17, %v674_v21  ;;  %v678_v25 = vsel %vm452_vm13, %v674_v21, 0  ;;  %v624_v26 = vsel %vm395_vm12, %v621_v22, %v623_v18  ;;  %v603_v45 = vpop.permute.xlu2 %602 }
 0x1e1   : > { %v680_v27 = vsel %vm1232_vm11, %v675_v24, 0  ;;  %v681_v28 = vsel %vm1236_vm14, %v678_v25, 0  ;;  %v629_v29 = vsel %vm1232_vm11, %v624_v26, 0 }
 0x1e2   : > { %v684_v31 = vunpack.c.l.b16 %v680_v27  ;;  %v685_v32 = vunpack.c.l.b16 %v681_v28  ;;  %v633_v33 = vunpack.c.l.b16 %v629_v29 }
 0x1e4   : > { %v686_v34 = vpack.c.b16 %v685_v32, %v684_v31  ;;  %v635_v35 = vpack.c.b16 %v634_v30, %v633_v33 }
 0x1e6   : > { %688 = vst [vmem:[#allocation2 + $0x20] sm:$0x33] %v686_v34  ;;  %v636_v36 = vrot.slane %v635_v35, 6 }
 0x1e7   : > { %v658_v37 = vpop.permute.xlu0 %657  ;;  %v660_v40 = vpop.permute.xlu1 %659 }
 0x1e8   : > { %638 = vst [vmem:[#allocation2 + $0x10] sm:$0xcc] %v636_v36  ;;  %v661_v41 = vsel %vm436_vm0, %v658_v37, %v660_v40  ;;  %v663_v42 = vsel %vm436_vm0, %v660_v40, 0  ;;  %v551_v5 = vpop.permute.xlu2 %550  ;;  %vm773_vm0 = vcmask 1043456  }
 0x1e9   : > { %v665_v43 = vunpack.c.l.b16 %v661_v41  ;;  %v666_v44 = vunpack.c.l.b16 %v663_v42  ;;  %v557_v19 = vsel %vm280_vm10, 0, %v551_v5 }
 0x1ea   : > { %v559_v28 = vsel %vm1258_vm6, %v557_v19, 0 }
 0x1eb   : > { %v667_v46 = vpack.c.b16 %v666_v44, %v665_v43  ;;  %v563_v36 = vunpack.c.l.b16 %v559_v28 }
 0x1ed   : > { %v668_v47 = vrot.slane %v667_v46, 6  ;;  %v694_v48 = vld [vmem:[#allocation2 + $0x20] sm:$0x33] }
 0x1ee   : > { %v714_v51 = vunpack.c.l.b16 %v694_v48  ;;  %v715_v52 = vunpack.c.h.b16 %v694_v48 }
 0x1ef   : > { %670 = vst [vmem:[#allocation2 + $0x18] sm:$0xcc] %v668_v47  ;;  %v642_v49 = vpop.permute.xlu0 %641  ;;  %v601_v50 = vpop.permute.xlu1 %600  ;;  %v901_v20 = vld [vmem:[#allocation2 + $0x10] sm:$0xf]  ;;  %v921_v21 = vld [vmem:[#allocation2 + $0x14] sm:$0xf] }
 0x1f0   : > { %v643_v53 = vsel %vm416_vm5, %v640_v23, %v642_v49  ;;  %v646_v54 = vsel %vm416_vm5, %v642_v49, 0  ;;  %v604_v55 = vsel %vm373_vm7, %v601_v50, %v603_v45  ;;  %v607_v56 = vsel %vm373_vm7, 0, %v601_v50  ;;  %v585_v25 = vpop.permute.xlu2 %584  ;;  %v762_v50 = vld.sshfl [vmem:[#allocation1] sm:$0xff pattern:$0x75316420] }
 0x1f1   : > { %v648_v57 = vsel %vm1258_vm6, %v643_v53, 0  ;;  %v649_v58 = vsel %vm1254_vm4, %v646_v54, 0  ;;  %v609_v60 = vsel %vm1258_vm6, %v607_v56, 0  ;;  %v610_v62 = vsel %vm1254_vm4, %v604_v55, 0 }
 0x1f2   : > { %v652_v63 = vunpack.c.l.b16 %v648_v57  ;;  %v653_v0 = vunpack.c.l.b16 %v649_v58  ;;  %v613_v1 = vunpack.c.l.b16 %v609_v60  ;;  %v614_v2 = vunpack.c.l.b16 %v610_v62 }
 0x1f3   : > { %v720_v3 = vpack.c.b16 %v714_v51, %v714_v51  ;;  %v721_v4 = vpack.c.b16 %v715_v52, %v715_v52  ;;  %v763_v52 = vld.sshfl [vmem:[#allocation1 + $0x8] sm:$0xff pattern:$0x75316420] }
 0x1f4   : > { %v654_v6 = vpack.c.b16 %v653_v0, %v652_v63  ;;  %v615_v7 = vpack.c.b16 %v614_v2, %v613_v1 }
 0x1f5   : > { %v730_v9 = vsel %vm509_vm9, %v720_v3, 0  ;;  %v733_v10 = vsel %vm509_vm9, %v721_v4, 0 }
 0x1f6   : > { %656 = vst [vmem:[#allocation2 + $0x18] sm:$0x33] %v654_v6  ;;  %v616_v11 = vrot.slane %v615_v7, 6  ;;  %740 = vmatpush.bf16.msra.mxu2 %v730_v9  ;;  %753 = vmatpush.bf16.msra.mxu3 %v733_v10 }
 0x1f7   : > { %v569_v12 = vpop.permute.xlu0 %568  ;;  %v571_v13 = vpop.permute.xlu1 %570 }
 0x1f8   : > { %618 = vst [vmem:[#allocation2 + $0x8] sm:$0xcc] %v616_v11  ;;  %v574_v14 = vsel %vm319_vm8, 0, %v569_v12  ;;  %v572_v15 = vsel %vm319_vm8, %v569_v12, %v571_v13 }
 0x1f9   : > { %v576_v16 = vunpack.c.l.b16 %v574_v14  ;;  %v577_v17 = vunpack.c.l.b16 %v572_v15 }
 0x1fb   : > { %v578_v18 = vpack.c.b16 %v577_v17, %v576_v16 }
 0x1fd   : > { %v579_v22 = vrot.slane %v578_v18, 6  ;;  %v922_v23 = vld [vmem:[#allocation2 + $0x14] sm:$0xf0]  ;;  %v903_v24 = vld [vmem:[#allocation2 + $0x18] sm:$0xf0] }
 0x1fe   : > { %v902_v26 = vor.u32 %v922_v23, %v901_v20  ;;  %v906_v27 = vor.u32 %v921_v21, %v903_v24 }
 0x1ff   : > { %581 = vst [vmem:[#allocation2] sm:$0xcc] %v579_v22  ;;  %v553_v29 = vpop.permute.xlu0 %552  ;;  %v583_v30 = vpop.permute.xlu1 %582 }
 0x200   : > { %v554_v31 = vsel %vm280_vm10, %v551_v5, %v553_v29  ;;  %v586_v32 = vsel %vm335_vm15, %v583_v30, %v585_v25  ;;  %v589_v33 = vsel %vm335_vm15, 0, %v583_v30  ;;  %741 = vmatpush.bf16.msra.mxu2 %v902_v26  ;;  %754 = vmatpush.bf16.msra.mxu3 %v906_v27 }
 0x201   : > { %v560_v34 = vsel %vm1254_vm4, %v554_v31, 0  ;;  %v591_v35 = vsel %vm1232_vm11, %v589_v33, 0  ;;  %v592_v61 = vsel %vm1236_vm14, %v586_v32, 0 }
 0x202   : > { %v564_v37 = vunpack.c.l.b16 %v560_v34  ;;  %v595_v40 = vunpack.c.l.b16 %v591_v35  ;;  %v596_v41 = vunpack.c.l.b16 %v592_v61 }
 0x204   : > { %v565_v42 = vpack.c.b16 %v564_v37, %v563_v36  ;;  %v597_v43 = vpack.c.b16 %v596_v41, %v595_v40 }
 0x206   : > { %567 = vst [vmem:[#allocation2] sm:$0x33] %v565_v42 }
 0x207   : > { %599 = vst [vmem:[#allocation2 + $0x8] sm:$0x33] %v597_v43  ;;  %v699_v39 = vpop.permute.xlu0 %698 }
 0x20d   : > { %v893_v44 = vld [vmem:[#allocation2] sm:$0xf]  ;;  %v919_v45 = vld [vmem:[#allocation2 + $0x4] sm:$0xf] }
 0x20e   : > { %v920_v46 = vld [vmem:[#allocation2 + $0x4] sm:$0xf0]  ;;  %v895_v59 = vld [vmem:[#allocation2 + $0x8] sm:$0xf0] }
 0x20f   : > { %v894_v47 = vor.u32 %v920_v46, %v893_v44  ;;  %v898_v48 = vor.u32 %v919_v45, %v895_v59 }
 0x211   : > { %742 = vmatpush.bf16.msra.mxu2 %v894_v47  ;;  %755 = vmatpush.bf16.msra.mxu3 %v898_v48 }
 0x214   : > { %907 = vmatmul.msk.bf16.vlgmr.msra.gmra.mxu2 %vm505_vm1, %v689_v38  ;;  %908 = vmatmul.msk.bf16.vlgmr.msra.gmra.mxu3 %vm505_vm1, %v689_v38 }
 0x297   : > { %v744_v49 = vpop.f32.mrf.mxu2  ;;  %v757_v51 = vpop.f32.mrf.mxu3 }
 0x298   : > { %v745_v53 = vadd.f32 %v744_v49, %v699_v39  ;;  %v758_v54 = vadd.f32 %v757_v51, %v699_v39 }
 0x29a   : > { %v766_v55 = vadd.f32 %v762_v50, %v745_v53  ;;  %v767_v56 = vadd.f32 %v763_v52, %v758_v54 }
 0x29c   : > { %v769_v57 = vmax.f32 %v767_v56, 0.0  ;;  %v768_v58 = vmax.f32 %v766_v55, 0.0 }
 0x29e   : > { %v772_v60 = vrot.slane %v769_v57, 4 }
 0x29f   : > { %v746_v62 = vpop.f32.mrf.mxu2  ;;  %v759_v63 = vpop.f32.mrf.mxu3 }
 0x2a0   : > { %v774_v0 = vsel %vm773_vm0, %v768_v58, %v772_v60 }
 0x2a1   : > { %776 = vst [vmem:[%s242_s25] sm:$0xff] %v774_v0 }
 0x2a2   : > { %1038 = shalt.err (!%p1035_p4)
}
 0x2a3   : > { %926 = dma.vmem_to_hbm [thread:$0]  (%p1168_p11), %s792_s26, 128, %s794_s8, %s778_s22  }
 0x2a4 PF: > { %s805_s7 = sand.u32 1, %s1065_s18   ;;  %p1418_p7 = scmp.ge.s32.totalorder %s1077_s21, 2 }
 0x2a5   : > { %s806_s15 = scalar_lea.sflag [#allocation5], %s805_s7 }
 0x2a6   : > { %p933_p5 = pnand %p1418_p7, %p1172_p12 }
 0x2a8   : > { %p934_p8 = pneg %p933_p5 }
 0x2aa   : > { %1060 = dma.done.wait (%p934_p8), %s806_s15, 128  }
 0x2ab   : > { %1062 = vsyncadd (%p934_p8), %s806_s15, 4294967168  ;;  %p18_p10 = scmp.ge.s32.totalorder %s1143_s24, 4   ;;  %s1419_s18 = smov %s1069_s19 }
 0x2ac   : > { %s1420_s19 = smov %s1073_s20  ;;  %s1421_s20 = smov %s1155_s27 }
 0x2ad   : > { %s1422_s21 = smov %s1143_s24  ;;  %20 = sbr.rel (!%p18_p10) target bundleno = 5 (0x5), region = 85 }
 0x2b2   :  { %812 = vsyncpa [#allocation4], 1 }
 0x2b3   :  { %814 = vsyncpa [#allocation4 + $0x1], 1 }
 0x2b4   :  { %815 = vsyncpa [#allocation5], 1 }
 0x2b5   :  { %817 = vsyncpa [#allocation5 + $0x1], 1 }

</bundles_post_ra>
